<compile_context>
chip_gen: v7x
topology: tpu7x:2x2x1
jax: 0.10.0
libtpu: 0.0.40
codegen_flags: <defaults>
</compile_context>

<pallas_src>
import math

import jax
import jax.numpy as jnp
from jax import lax
from jax.experimental import pallas as pl
from jax.experimental.pallas import tpu as pltpu

# Same gamma list as the PyTorch module default.
GAMMAS = (0.001, 0.01, 0.1, 1.0, 10.0, 100.0, 1000.0)


def _gamma_plan(gammas):
    """Group gammas into (anchor, also_emit_anchor_times_10) pairs.

    Anchors are evaluated with exp() (EUP); a gamma exactly one decade above its
    anchor is derived as anchor**10 on the VPU.  Any gamma that does not sit one
    decade above the previous one simply becomes its own anchor.
    """
    plan = []
    i = 0
    while i < len(gammas):
        g = gammas[i]
        chain = (i + 1 < len(gammas)) and math.isclose(
            gammas[i + 1], 10.0 * g, rel_tol=1e-9)
        plan.append((float(g), chain))
        i += 2 if chain else 1
    return tuple(plan)


_GAMMA_PLAN = _gamma_plan(GAMMAS)   # ((0.001,T), (0.1,T), (10.0,T), (1000.0,F))


def _pow10(x):
    # x**10 with 4 multiplies: x^10 = x^8 * x^2.
    x2 = x * x
    x4 = x2 * x2
    x8 = x4 * x4
    return x8 * x2


def _round_up(x, k):
    return (x + k - 1) // k * k


def _make_kernel(n, m, tm, tn, symmetric, masked):
    """Build the tile kernel (closure over static shape / mode parameters)."""

    def kernel(a_ref, b_ref, an_ref, bn_ref, o_ref, acc_ref):
        i = pl.program_id(0)
        j = pl.program_id(1)

        @pl.when(j == 0)
        def _init():
            acc_ref[...] = jnp.zeros_like(acc_ref)

        def accumulate(weight):
            a = a_ref[...]                       # (tm, D) f32
            b = b_ref[...]                       # (tn, D) f32
            # MXU contraction over the feature axis of BOTH operands — no
            # transpose of the B tile inside the kernel.
            ab = lax.dot_general(
                a, b,
                dimension_numbers=(((1,), (1,)), ((), ())),
                preferred_element_type=jnp.float32)          # (tm, tn)
            # addmm(x2_norm.T, x1, x2.T, alpha=-2) + x1_norm, then clamp_min_(1e-30)
            d = an_ref[...] + bn_ref[...] - 2.0 * ab
            d = jnp.maximum(d, jnp.float32(1e-30))
            if masked:
                row = i * tm + lax.broadcasted_iota(jnp.int32, (tm, tn), 0)
                col = j * tn + lax.broadcasted_iota(jnp.int32, (tm, tn), 1)
                valid = jnp.logical_and(row < n, col < m)
                # exp(-g * 1e30) == 0 for every gamma -> padded pairs drop out.
                d = jnp.where(valid, d, jnp.float32(1e30))

            # Multi-gamma kernel sum.  Only anchor gammas hit the EUP; the
            # one-decade-up partner is derived on the VPU (free under the EUP).
            ksum = None
            for g, chain in _GAMMA_PLAN:
                e = jnp.exp(d * jnp.float32(-g))
                ksum = e if ksum is None else ksum + e
                if chain:
                    ksum = ksum + _pow10(e)

            if weight is None:
                acc_ref[...] = acc_ref[...] + ksum
            else:
                acc_ref[...] = acc_ref[...] + weight * ksum

        if symmetric:
            # Block-level triangle: skip strictly-lower blocks, double
            # strictly-upper blocks, count diagonal blocks once (tm == tn).
            @pl.when(j >= i)
            def _compute():
                accumulate(jnp.where(j > i, jnp.float32(2.0), jnp.float32(1.0)))
        else:
            accumulate(None)

        @pl.when(j == pl.num_programs(1) - 1)
        def _epilogue():
            # Fold the (tm, tn) accumulator into an (8, tn) lane-dense partial
            # with cheap tile-aligned slab adds (pure VPU, no XLU reduce).
            acc = acc_ref[...]
            part = acc[0:8, :]
            for r in range(1, tm // 8):
                part = part + acc[r * 8:(r + 1) * 8, :]
            o_ref[...] = part

    return kernel


def gaussian_kernel_sum(a, b, *, symmetric=False, tm=256, tn=256):
    """sum_{i<n, j<m, g in GAMMAS} exp(-g * D_ij), as float32."""
    n, d_feat = a.shape
    m, d_feat2 = b.shape
    assert d_feat == d_feat2
    assert tm % 8 == 0 and tn % 128 == 0
    if symmetric:
        assert n == m and tm == tn, "symmetric path needs square tiles / inputs"

    # Shrink tiles for small inputs (single-block case keeps BlockSpecs legal
    # because every block then equals the full array dims).
    tm_eff = min(tm, _round_up(n, 8))
    tn_eff = min(tn, _round_up(m, 8))

    n_pad = _round_up(n, tm_eff)
    m_pad = _round_up(m, tn_eff)
    masked = (n_pad != n) or (m_pad != m)

    a32 = a.astype(jnp.float32)
    b32 = b.astype(jnp.float32)
    if n_pad != n:
        a32 = jnp.pad(a32, ((0, n_pad - n), (0, 0)))
    if m_pad != m:
        b32 = jnp.pad(b32, ((0, m_pad - m), (0, 0)))

    # Hoisted row norms (computed once in XLA, not once per (i, j) tile).
    a_norm = jnp.sum(a32 * a32, axis=-1, keepdims=True)          # (n_pad, 1)
    b_norm = jnp.sum(b32 * b32, axis=-1, keepdims=True).T        # (1, m_pad)

    grid_i = n_pad // tm_eff
    grid_j = m_pad // tn_eff

    kernel = _make_kernel(n, m, tm_eff, tn_eff, symmetric, masked)

    partials = pl.pallas_call(
        kernel,
        out_shape=jax.ShapeDtypeStruct((grid_i * 8, tn_eff), jnp.float32),
        grid_spec=pltpu.PrefetchScalarGridSpec(
            num_scalar_prefetch=0,
            grid=(grid_i, grid_j),
            in_specs=[
                pl.BlockSpec((tm_eff, d_feat), lambda i, j: (i, 0)),   # A tile
                pl.BlockSpec((tn_eff, d_feat), lambda i, j: (j, 0)),   # B tile
                pl.BlockSpec((tm_eff, 1), lambda i, j: (i, 0)),        # ||a||^2
                pl.BlockSpec((1, tn_eff), lambda i, j: (0, j)),        # ||b||^2
            ],
            out_specs=pl.BlockSpec((8, tn_eff), lambda i, j: (i, 0)),
            scratch_shapes=[pltpu.VMEM((tm_eff, tn_eff), jnp.float32)],
        ),
        compiler_params=pltpu.CompilerParams(
            # outer (i) axis independent -> shardable across TCs; inner (j) axis
            # accumulates into the per-i scratch -> arbitrary.
            dimension_semantics=("parallel", "arbitrary"),
        ),
    )(a32, b32, a_norm, b_norm)

    return jnp.sum(partials)


def gaussian_kernel_mean(a, b, *, symmetric=False, tm=256, tn=256):
    n = a.shape[0]
    m = b.shape[0]
    total = gaussian_kernel_sum(a, b, symmetric=symmetric, tm=tm, tn=tn)
    return total / (n * m * len(GAMMAS))


def mmd(x, y):
    kxx = gaussian_kernel_mean(x, x, symmetric=True)
    kyy = gaussian_kernel_mean(y, y, symmetric=True)
    kxy = gaussian_kernel_mean(x, y)
    return kxx + kyy - 2.0 * kxy


# ---- pure-JAX reference for a correctness check -----------------------------
def _ref_gaussian_kernel_mean(a, b):
    a = a.astype(jnp.float32)
    b = b.astype(jnp.float32)
    a_norm = jnp.sum(a * a, axis=-1, keepdims=True)
    b_norm = jnp.sum(b * b, axis=-1, keepdims=True)
    d = jnp.maximum(a_norm + b_norm.T - 2.0 * a @ b.T, 1e-30)
    k = sum(jnp.exp(-g * d) for g in GAMMAS) / len(GAMMAS)
    return jnp.mean(k)


def _ref_mmd(x, y):
    return (_ref_gaussian_kernel_mean(x, x)
            + _ref_gaussian_kernel_mean(y, y)
            - 2.0 * _ref_gaussian_kernel_mean(x, y))


if __name__ == "__main__":
    key = jax.random.PRNGKey(0)
    kx, ky, kx2, ky2 = jax.random.split(key, 4)

    # Small case (single block per call).
    x = jax.random.normal(kx, (16, 32), dtype=jnp.float32)
    y = 0.5 * jax.random.normal(ky, (16, 32), dtype=jnp.float32) + 0.25
    out = jax.block_until_ready(mmd(x, y))
    ref = _ref_mmd(x, y)
    assert jnp.allclose(out, ref, rtol=2e-5, atol=2e-6), (out, ref)

    # Larger, non-multiple case: exercises the multi-block grid (small tiles so the
    # padding mask + block-triangle symmetric path actually run), and default tiles.
    x2 = jax.random.normal(kx2, (200, 32), dtype=jnp.float32)
    y2 = 0.7 * jax.random.normal(ky2, (136, 32), dtype=jnp.float32) - 0.1
    out2 = jax.block_until_ready(mmd(x2, y2))
    ref2 = _ref_mmd(x2, y2)
    assert jnp.allclose(out2, ref2, rtol=2e-5, atol=2e-6), (out2, ref2)

    # Same data forced through the tiled/masked/triangular code paths.
    out3 = jax.block_until_ready(
        gaussian_kernel_mean(x2, x2, symmetric=True, tm=128, tn=128)
        + gaussian_kernel_mean(y2, y2, symmetric=True, tm=128, tn=128)
        - 2.0 * gaussian_kernel_mean(x2, y2, tm=128, tn=128))
    assert jnp.allclose(out3, ref2, rtol=2e-5, atol=2e-6), (out3, ref2)

    print("KERNEL_OK")
</pallas_src>

<mosaic_0001>
module attributes {stable_mosaic.version = 11 : i64} {
  func.func @kernel(%arg0: i32, %arg1: i32, %arg2: memref<16x32xf32, #tpu.memory_space<vmem>>, %arg3: memref<16x32xf32, #tpu.memory_space<vmem>>, %arg4: memref<16x1xf32, #tpu.memory_space<vmem>>, %arg5: memref<1x16xf32, #tpu.memory_space<vmem>>, %arg6: memref<8x16xf32, #tpu.memory_space<vmem>>, %arg7: memref<16x16xf32, #tpu.memory_space<vmem>>) attributes {dimension_semantics = [#tpu.dimension_semantics<parallel>, #tpu.dimension_semantics<arbitrary>], iteration_bounds = array<i64: 1, 1>, scalar_prefetch = 0 : i64, scratch_operands = 1 : i64, tpu.core_type = #tpu.core_type<tc>, window_params = [{transform_indices = @transform_0, window_bounds = array<i64: 16, 32>}, {transform_indices = @transform_1, window_bounds = array<i64: 16, 32>}, {transform_indices = @transform_2, window_bounds = array<i64: 16, 1>}, {transform_indices = @transform_3, window_bounds = array<i64: 1, 16>}, {transform_indices = @transform_4, window_bounds = array<i64: 8, 16>}]} {
    %c0_i32 = arith.constant 0 : i32
    %0 = arith.cmpi eq, %arg1, %c0_i32 : i32
    %1 = arith.extui %0 : i1 to i32
    %c0_i32_0 = arith.constant 0 : i32
    %2 = arith.cmpi ne, %1, %c0_i32_0 : i32
    scf.if %2 {
      %cst = arith.constant 0.000000e+00 : f32
      %9 = vector.broadcast %cst : f32 to vector<16x16xf32>
      %c0 = arith.constant 0 : index
      %c0_4 = arith.constant 0 : index
      %10 = vector.load %arg7[%c0, %c0_4] : memref<16x16xf32, #tpu.memory_space<vmem>>, vector<16x16xf32>
      tpu.vector_store %arg7[%c0, %c0_4], %9 {strides = array<i32>} : memref<16x16xf32, #tpu.memory_space<vmem>>, vector<16x16xf32>,
    } else {
    }
    %3 = arith.cmpi sge, %arg1, %arg0 : i32
    %4 = arith.extui %3 : i1 to i32
    %c0_i32_1 = arith.constant 0 : i32
    %5 = arith.cmpi ne, %4, %c0_i32_1 : i32
    scf.if %5 {
      %9 = arith.cmpi sgt, %arg1, %arg0 : i32
      %cst = arith.constant 2.000000e+00 : f32
      %cst_4 = arith.constant 1.000000e+00 : f32
      %10 = arith.select %9, %cst, %cst_4 : f32
      %c0 = arith.constant 0 : index
      %c0_5 = arith.constant 0 : index
      %11 = vector.load %arg2[%c0, %c0_5] : memref<16x32xf32, #tpu.memory_space<vmem>>, vector<16x32xf32>
      %c0_6 = arith.constant 0 : index
      %c0_7 = arith.constant 0 : index
      %12 = vector.load %arg3[%c0_6, %c0_7] : memref<16x32xf32, #tpu.memory_space<vmem>>, vector<16x32xf32>
      %cst_8 = arith.constant dense<0.000000e+00> : vector<16x16xf32>
      %13 = tpu.matmul %11, %12, %cst_8 {dimension_numbers = #tpu.dot_dimension_numbers<[1], [1], [0], [0], [0, 0, 1, 0], [], []>} : vector<16x32xf32>, vector<16x32xf32>, vector<16x16xf32> -> vector<16x16xf32>
      %c0_9 = arith.constant 0 : index
      %c0_10 = arith.constant 0 : index
      %14 = vector.load %arg4[%c0_9, %c0_10] : memref<16x1xf32, #tpu.memory_space<vmem>>, vector<16x1xf32>
      %c0_11 = arith.constant 0 : index
      %c0_12 = arith.constant 0 : index
      %15 = vector.load %arg5[%c0_11, %c0_12] : memref<1x16xf32, #tpu.memory_space<vmem>>, vector<1x16xf32>
      %16 = vector.broadcast %14 : vector<16x1xf32> to vector<16x16xf32>
      %17 = vector.broadcast %15 : vector<1x16xf32> to vector<16x16xf32>
      %18 = arith.addf %16, %17 : vector<16x16xf32>
      %cst_13 = arith.constant 2.000000e+00 : f32
      %19 = vector.broadcast %cst_13 : f32 to vector<16x16xf32>
      %20 = arith.mulf %19, %13 : vector<16x16xf32>
      %21 = arith.subf %18, %20 : vector<16x16xf32>
      %cst_14 = arith.constant 1.000000e-30 : f32
      %22 = vector.broadcast %cst_14 : f32 to vector<16x16xf32>
      %23 = arith.maximumf %21, %22 : vector<16x16xf32>
      %cst_15 = arith.constant -1.000000e-03 : f32
      %24 = vector.broadcast %cst_15 : f32 to vector<16x16xf32>
      %25 = arith.mulf %23, %24 : vector<16x16xf32>
      %26 = math.exp %25 : vector<16x16xf32>
      %27 = arith.mulf %26, %26 : vector<16x16xf32>
      %28 = arith.mulf %27, %27 : vector<16x16xf32>
      %29 = arith.mulf %28, %28 : vector<16x16xf32>
      %30 = arith.mulf %29, %27 : vector<16x16xf32>
      %31 = arith.addf %26, %30 : vector<16x16xf32>
      %cst_16 = arith.constant -1.000000e-01 : f32
      %32 = vector.broadcast %cst_16 : f32 to vector<16x16xf32>
      %33 = arith.mulf %23, %32 : vector<16x16xf32>
      %34 = math.exp %33 : vector<16x16xf32>
      %35 = arith.addf %31, %34 : vector<16x16xf32>
      %36 = arith.mulf %34, %34 : vector<16x16xf32>
      %37 = arith.mulf %36, %36 : vector<16x16xf32>
      %38 = arith.mulf %37, %37 : vector<16x16xf32>
      %39 = arith.mulf %38, %36 : vector<16x16xf32>
      %40 = arith.addf %35, %39 : vector<16x16xf32>
      %cst_17 = arith.constant -1.000000e+01 : f32
      %41 = vector.broadcast %cst_17 : f32 to vector<16x16xf32>
      %42 = arith.mulf %23, %41 : vector<16x16xf32>
      %43 = math.exp %42 : vector<16x16xf32>
      %44 = arith.addf %40, %43 : vector<16x16xf32>
      %45 = arith.mulf %43, %43 : vector<16x16xf32>
      %46 = arith.mulf %45, %45 : vector<16x16xf32>
      %47 = arith.mulf %46, %46 : vector<16x16xf32>
      %48 = arith.mulf %47, %45 : vector<16x16xf32>
      %49 = arith.addf %44, %48 : vector<16x16xf32>
      %cst_18 = arith.constant -1.000000e+03 : f32
      %50 = vector.broadcast %cst_18 : f32 to vector<16x16xf32>
      %51 = arith.mulf %23, %50 : vector<16x16xf32>
      %52 = math.exp %51 : vector<16x16xf32>
      %53 = arith.addf %49, %52 : vector<16x16xf32>
      %c0_19 = arith.constant 0 : index
      %c0_20 = arith.constant 0 : index
      %54 = vector.load %arg7[%c0_19, %c0_20] : memref<16x16xf32, #tpu.memory_space<vmem>>, vector<16x16xf32>
      %55 = vector.broadcast %10 : f32 to vector<16x16xf32>
      %56 = arith.mulf %55, %53 : vector<16x16xf32>
      %57 = arith.addf %54, %56 : vector<16x16xf32>
      %c0_21 = arith.constant 0 : index
      %c0_22 = arith.constant 0 : index
      %58 = vector.load %arg7[%c0_21, %c0_22] : memref<16x16xf32, #tpu.memory_space<vmem>>, vector<16x16xf32>
      tpu.vector_store %arg7[%c0_21, %c0_22], %57 {strides = array<i32>} : memref<16x16xf32, #tpu.memory_space<vmem>>, vector<16x16xf32>,
    } else {
    }
    %c0_i32_2 = arith.constant 0 : i32
    %6 = arith.cmpi eq, %arg1, %c0_i32_2 : i32
    %7 = arith.extui %6 : i1 to i32
    %c0_i32_3 = arith.constant 0 : i32
    %8 = arith.cmpi ne, %7, %c0_i32_3 : i32
    scf.if %8 {
      %c0 = arith.constant 0 : index
      %c0_4 = arith.constant 0 : index
      %9 = vector.load %arg7[%c0, %c0_4] : memref<16x16xf32, #tpu.memory_space<vmem>>, vector<16x16xf32>
      %10 = vector.extract_strided_slice %9 {offsets = [0, 0], sizes = [8, 16], strides = [1, 1]} : vector<16x16xf32> to vector<8x16xf32>
      %11 = vector.extract_strided_slice %9 {offsets = [8, 0], sizes = [8, 16], strides = [1, 1]} : vector<16x16xf32> to vector<8x16xf32>
      %12 = arith.addf %10, %11 : vector<8x16xf32>
      %c0_5 = arith.constant 0 : index
      %c0_6 = arith.constant 0 : index
      %13 = vector.load %arg6[%c0_5, %c0_6] : memref<8x16xf32, #tpu.memory_space<vmem>>, vector<8x16xf32>
      tpu.vector_store %arg6[%c0_5, %c0_6], %12 {strides = array<i32>} : memref<8x16xf32, #tpu.memory_space<vmem>>, vector<8x16xf32>,
    } else {
    }
    return
  }
  func.func @transform_0(%arg0: i32, %arg1: i32) -> (i32, i32) {
    %c0_i32 = arith.constant 0 : i32
    %c0_i32_0 = arith.constant 0 : i32
    return %arg0, %c0_i32 : i32, i32
  }
  func.func @transform_1(%arg0: i32, %arg1: i32) -> (i32, i32) {
    %c0_i32 = arith.constant 0 : i32
    %c0_i32_0 = arith.constant 0 : i32
    return %arg1, %c0_i32 : i32, i32
  }
  func.func @transform_2(%arg0: i32, %arg1: i32) -> (i32, i32) {
    %c0_i32 = arith.constant 0 : i32
    %c0_i32_0 = arith.constant 0 : i32
    return %arg0, %c0_i32 : i32, i32
  }
  func.func @transform_3(%arg0: i32, %arg1: i32) -> (i32, i32) {
    %c0_i32 = arith.constant 0 : i32
    %c0_i32_0 = arith.constant 0 : i32
    return %c0_i32, %arg1 : i32, i32
  }
  func.func @transform_4(%arg0: i32, %arg1: i32) -> (i32, i32) {
    %c0_i32 = arith.constant 0 : i32
    %c0_i32_0 = arith.constant 0 : i32
    return %arg0, %c0_i32 : i32, i32
  }
}

</mosaic_0001>

<bundles_post_ra>
// kernel: tpu_custom_call.1
= control target key start
LH: loop header
LB: loop body
LE: loop exit
PB: predicated region body
PF: predicated region fallthrough
CT: control target
= control target key end

     0   :  { %9 = vsyncpa [#allocation4], 0  ;;  %s425_s0 = inlined_call_operand.vmem [shape: f32[16,32], index: 0, kind: input, shape index: {}]   ;;  %s426_s1 = inlined_call_operand.hbm [shape: f32[16,32], index: 1, kind: input, shape index: {}]   ;;  %s427_s2 = inlined_call_operand.vmem [shape: f32[16,1], index: 2, kind: input, shape index: {}]   ;;  %s428_s3 = inlined_call_operand.vmem [shape: f32[1,16], index: 3, kind: input, shape index: {}]   ;;  %s429_s4 = inlined_call_operand.hbm [shape: f32[8,16], index: 4, kind: output, shape index: {}]  }
   0x1   :  { %10 = vsyncpa [#allocation5], 0  ;;  %s350_s15 = smov [#allocation3]   ;;  %s302_s19 = scalar_lea.hbm %s426_s1, 256 }
   0x2   :  { %s18_s16 = sshll.u32 %s350_s15, 4  ;;  %p303_p0 = scmp.ne.s32.totalorder %s426_s1, %s302_s19  ;;  %s19_s16 = int_to_ptr.vmem [resolvable:$true] %s18_s16 }
   0x3   :  { %p306_p1 = scmp.lt.u32.totalorder %s302_s19, %s426_s1 }
   0x5   :  { %p308_p2 = pnand %p306_p1, %p303_p0 }
   0x7   :  { %311 = shalt.err (!%p308_p2)
}
   0x8   :  { %s312_s24 = scalar_lea.vmem %s19_s16, 256  ;;  %p317_p4 = scmp.lt.s32.totalorder %s19_s16, %s19_s16 }
   0x9   :  { %p313_p3 = scmp.ne.s32.totalorder %s19_s16, %s312_s24  ;;  %p318_p5 = scmp.lt.s32.totalorder %s312_s24, %s312_s24 }
   0xb   :  { %p319_p6 = por %p318_p5, %p317_p4 }
   0xd   :  { %p320_p7 = pnand %p319_p6, %p313_p3 }
   0xf   :  { %323 = shalt.err (!%p320_p7)
}
  0x10   :  { %s351_s25 = smov 128   ;;  %s352_s26 = smov 8  }
  0x11   :  { %24 = dma.hbm_to_vmem [thread:$0]  %s426_s1, 256, %s19_s16, [#allocation4], %s351_s25, %s351_s25, %s352_s26  }
  0x12   :  { %346 = dma.done.wait [#allocation4], 256  }
  0x13   :  { %347 = vsyncadd [#allocation4], 4294967040  ;;  %v353_v0 = vmov 0   ;;  %vm49_vm0 = vcmask 261120   ;;  %v47_v1 = vld [vmem:[#allocation3] sm:$0xff]  ;;  %v48_v2 = vld [vmem:[#allocation3 + $0x8] sm:$0xff] }
  0x14   :  { %285 = vset.pattern.permute.xlu0 %v353_v0  ;;  %vm274_vm1 = vmpackc.low %vm49_vm0, %vm49_vm0  ;;  %v45_v3 = vld [vmem:[%s425_s0] sm:$0xff]  ;;  %v273_v4 = vpack.c.bf16 %v48_v2, %v47_v1  ;;  %v138_v6 = vld [vmem:[%s427_s2 + $0x8] sm:$0xff]  ;;  %vm36_vm2 = vcmask 130048   ;;  %v354_v8 = vmov 0.0  }
  0x15   :  { %270 = vmatprep.mubr.msk.f32.mxu0 %vm49_vm0, %v45_v3  ;;  %v137_v5 = vld [vmem:[%s427_s2] sm:$0xff]  ;;  %v46_v7 = vld [vmem:[%s425_s0 + $0x8] sm:$0xff]  ;;  %37 = vst.msk [vmem:[#allocation2] sm:$0xff] %vm36_vm2, %v354_v8  ;;  %38 = vst.msk [vmem:[#allocation2 + $0x8] sm:$0xff] %vm36_vm2, %v354_v8  ;;  %s355_s0 = smov [#allocation6]  }
  0x16   :  { %142 = vperm.xlu0 %285, %v137_v5   ;;  %275 = vmatprep.subr.msk.bf16.mxu0 %vm274_vm1, %v273_v4  ;;  %v261_v10 = vld [vmem:[%s428_s3] ss:$0 sm:$0xff]  ;;  %s248_s2 = sshll.u32 %s355_s0, 4  ;;  %s249_s2 = int_to_ptr.vmem [resolvable:$true] %s248_s2 }
  0x17   :  { %278 = vmatpush3.bf16.xpose.msk.msra.mxu0 %vm274_vm1, %v273_v4  ;;  %s324_s3 = scalar_lea.vmem %s249_s2, 128  ;;  %p329_p9 = scmp.lt.s32.totalorder %s249_s2, %s249_s2 }
  0x18   :  { %p325_p8 = scmp.ne.s32.totalorder %s249_s2, %s324_s3  ;;  %p330_p10 = scmp.lt.s32.totalorder %s324_s3, %s324_s3 }
  0x1a   :  { %147 = vperm.xlu0 %285, %v138_v6   ;;  %p331_p11 = por %p330_p10, %p329_p9 }
  0x1c   :  { %p332_p12 = pnand %p331_p11, %p325_p8 }
  0x1e   :  { %271 = vmatmul.mubr.msk.f32.vlgmr.msra.gmra.mrb[0].mxu0 %vm49_vm0, %v46_v7 }
  0x95   :  { %v143_v9 = vpop.permute.xlu0 %142 }
  0x96   :  { %v156_v16 = vadd.f32 %v261_v10, %v143_v9 }
  0x99   :  { %v148_v11 = vpop.permute.xlu0 %147 }
  0x9a   :  { %v157_v13 = vadd.f32 %v261_v10, %v148_v11 }
  0xf1   :  { %v272_v12 = vpop.f32.mrb[0].mxu0 }
  0xf2   :  { %v159_v14 = vmul.f32 2.0, %v272_v12  ;;  %v128_v15 = vpop.f32.mrb[1].mxu0  ;;  %v225_v12 = vld [vmem:[#allocation2 + $0x8] sm:$0xff] }
  0xf3   :  { %v158_v17 = vmul.f32 2.0, %v128_v15 }
  0xf4   :  { %v161_v18 = vsub.f32 %v157_v13, %v159_v14 }
  0xf5   :  { %v160_v19 = vsub.f32 %v156_v16, %v158_v17 }
  0xf6   :  { %v163_v20 = vmax.f32 %v161_v18, 1e-30 }
  0xf7   :  { %v162_v21 = vmax.f32 %v160_v19, 1e-30  ;;  %v224_v19 = vld [vmem:[#allocation2] sm:$0xff] }
  0xf8   :  { %v165_v22 = vmul.f32 -0.001, %v163_v20  ;;  %v181_v23 = vmul.f32 -0.1, %v163_v20  ;;  %v199_v24 = vmul.f32 -10.0, %v163_v20  ;;  %v217_v35 = vmul.f32 -1000.0, %v163_v20 }
  0xf9   :  { %v164_v25 = vmul.f32 -0.001, %v162_v21  ;;  %v180_v26 = vmul.f32 -0.1, %v162_v21  ;;  %v198_v27 = vmul.f32 -10.0, %v162_v21  ;;  %v216_v45 = vmul.f32 -1000.0, %v162_v21 }
  0xfa   :  { %v168_v28 = vmul.f32 1.442695, %v165_v22  ;;  %v184_v29 = vmul.f32 1.442695, %v181_v23  ;;  %v202_v30 = vmul.f32 1.442695, %v199_v24 }
  0xfb   :  { %v166_v31 = vmul.f32 1.442695, %v164_v25  ;;  %v182_v32 = vmul.f32 1.442695, %v180_v26  ;;  %v200_v33 = vmul.f32 1.442695, %v198_v27 }
  0xfc   :  { %286 = vpow2.f32 %v168_v28  ;;  %v220_v44 = vmul.f32 1.442695, %v217_v35  ;;  %v218_v57 = vmul.f32 1.442695, %v216_v45 }
  0xfd   :  { %288 = vpow2.f32 %v184_v29 }
  0xfe   :  { %290 = vpow2.f32 %v202_v30 }
  0xff   :  { %292 = vpow2.f32 %v166_v31 }
 0x100   :  { %294 = vpow2.f32 %v182_v32 }
 0x101   :  { %296 = vpow2.f32 %v200_v33 }
 0x102   :  { %298 = vpow2.f32 %v220_v44 }
 0x103   :  { %300 = vpow2.f32 %v218_v57 }
 0x106   :  { %v287_v34 = vpop.eup %286 }
 0x107   :  { %v289_v36 = vpop.eup %288  ;;  %v171_v37 = vmul.f32 %v287_v34, %v287_v34 }
 0x108   :  { %v291_v38 = vpop.eup %290  ;;  %v189_v39 = vmul.f32 %v289_v36, %v289_v36 }
 0x109   :  { %v173_v40 = vmul.f32 %v171_v37, %v171_v37  ;;  %v207_v41 = vmul.f32 %v291_v38, %v291_v38  ;;  %v293_v42 = vpop.eup %292 }
 0x10a   :  { %v191_v43 = vmul.f32 %v189_v39, %v189_v39  ;;  %v295_v46 = vpop.eup %294  ;;  %v170_v48 = vmul.f32 %v293_v42, %v293_v42 }
 0x10b   :  { %v175_v47 = vmul.f32 %v173_v40, %v173_v40  ;;  %v297_v49 = vpop.eup %296  ;;  %v209_v51 = vmul.f32 %v207_v41, %v207_v41  ;;  %v188_v52 = vmul.f32 %v295_v46, %v295_v46 }
 0x10c   :  { %v193_v50 = vmul.f32 %v191_v43, %v191_v43  ;;  %v172_v54 = vmul.f32 %v170_v48, %v170_v48  ;;  %v206_v55 = vmul.f32 %v297_v49, %v297_v49  ;;  %v299_v11 = vpop.eup %298 }
 0x10d   :  { %v177_v53 = vmul.f32 %v175_v47, %v171_v37  ;;  %v190_v56 = vmul.f32 %v188_v52, %v188_v52  ;;  %v211_v61 = vmul.f32 %v209_v51, %v209_v51  ;;  %v301_v18 = vpop.eup %300 }
 0x10e   :  { %v174_v59 = vmul.f32 %v172_v54, %v172_v54  ;;  %v195_v60 = vmul.f32 %v193_v50, %v189_v39  ;;  %v208_v1 = vmul.f32 %v206_v55, %v206_v55 }
 0x10f   :  { %v179_v58 = vadd.f32 %v287_v34, %v177_v53  ;;  %v192_v0 = vmul.f32 %v190_v56, %v190_v56  ;;  %v213_v4 = vmul.f32 %v211_v61, %v207_v41 }
 0x110   :  { %v176_v63 = vmul.f32 %v174_v59, %v170_v48  ;;  %v210_v8 = vmul.f32 %v208_v1, %v208_v1 }
 0x111   :  { %v187_v62 = vadd.f32 %v289_v36, %v179_v58  ;;  %v194_v7 = vmul.f32 %v192_v0, %v188_v52 }
 0x112   :  { %v178_v3 = vadd.f32 %v293_v42, %v176_v63  ;;  %v212_v15 = vmul.f32 %v210_v8, %v206_v55 }
 0x113   :  { %v197_v2 = vadd.f32 %v195_v60, %v187_v62 }
 0x114   :  { %v186_v6 = vadd.f32 %v295_v46, %v178_v3 }
 0x115   :  { %v205_v5 = vadd.f32 %v291_v38, %v197_v2 }
 0x116   :  { %v196_v10 = vadd.f32 %v194_v7, %v186_v6 }
 0x117   :  { %v215_v9 = vadd.f32 %v213_v4, %v205_v5 }
 0x118   :  { %v204_v14 = vadd.f32 %v297_v49, %v196_v10 }
 0x119   :  { %v223_v13 = vadd.f32 %v299_v11, %v215_v9 }
 0x11a   :  { %v214_v16 = vadd.f32 %v212_v15, %v204_v14 }
 0x11b   :  { %v230_v17 = vadd.f32 %v225_v12, %v223_v13 }
 0x11c   :  { %v222_v20 = vadd.f32 %v301_v18, %v214_v16 }
 0x11d   :  { %233 = vst.msk [vmem:[#allocation2 + $0x8] sm:$0xff] %vm36_vm2, %v230_v17 }
 0x11e   :  { %v229_v21 = vadd.f32 %v224_v19, %v222_v20 }
 0x120   :  { %232 = vst.msk [vmem:[#allocation2] sm:$0xff] %vm36_vm2, %v229_v21 }
 0x124   :  { %v238_v22 = vld [vmem:[#allocation2 + $0x8] sm:$0xff] }
 0x127   :  { %v237_v23 = vld [vmem:[#allocation2] sm:$0xff] }
 0x128   :  { %v239_v24 = vadd.f32 %v238_v22, %v237_v23 }
 0x12a   :  { %241 = vst.msk [vmem:[#allocation6] sm:$0xff] %vm36_vm2, %v239_v24 }
 0x12b   :  { %335 = shalt.err (!%p332_p12)
}
 0x12c   :  { %s336_s14 = scalar_lea.hbm %s429_s4, 128 }
 0x12d   :  { %p337_p13 = scmp.ne.s32.totalorder %s429_s4, %s336_s14  ;;  %p340_p0 = scmp.lt.u32.totalorder %s336_s14, %s429_s4 }
 0x12f   :  { %p342_p1 = pnand %p340_p0, %p337_p13 }
 0x131   :  { %345 = shalt.err (!%p342_p1)
}
 0x132   :  { %251 = dma.vmem_to_hbm [thread:$0]  %s249_s2, 128, %s429_s4, [#allocation5]  }
 0x133   :  { %348 = dma.done.wait [#allocation5], 128  }
 0x134   :  { %349 = vsyncadd [#allocation5], 4294967168 }
 0x135   :  { %255 = vsyncpa [#allocation4], 1 }
 0x136   :  { %256 = vsyncpa [#allocation5], 1 }

</bundles_post_ra>
